<compile_context>
chip_gen: v7x
topology: tpu7x:2x2x1
jax: 0.10.0
libtpu: 0.0.40
codegen_flags: <defaults>
</compile_context>

<pallas_src>
import jax
import jax.numpy as jnp
from jax.experimental import pallas as pl
from jax.experimental.pallas import tpu as pltpu


def _alias_identity_kernel(x_ref, o_ref):
    """o_ref is aliased to x_ref (input_output_aliases={0: 0}).

    The identity needs no data movement at all: the output buffer already
    contains x1, so the body is intentionally empty (no loads, no stores,
    no DMA issued).
    """
    del x_ref, o_ref


def _hbm_copy_kernel(x_ref, o_ref, sem):
    """Fill a fresh output with a single whole-array HBM->HBM DMA."""
    cp = pltpu.make_async_copy(x_ref, o_ref, sem)
    cp.start()
    cp.wait()


def id_forward(x1, x2=None, *, donate=True, bypass=False):
    """Pallas equivalent of ID.forward(x1, x2) == x1.

    x2 is accepted for API parity but never touched and never passed to
    pallas_call (no HBM bandwidth spent on it).
    """
    del x2
    if bypass:
        return x1  # zero-byte roofline; kernel intentionally skipped

    out_shape = jax.ShapeDtypeStruct(x1.shape, x1.dtype)

    if donate:
        # Zero-copy identity: output aliases the input, empty kernel body.
        return pl.pallas_call(
            _alias_identity_kernel,
            out_shape=out_shape,
            in_specs=[pl.BlockSpec(memory_space=pl.ANY)],
            out_specs=pl.BlockSpec(memory_space=pl.ANY),
            input_output_aliases={0: 0},
            compiler_params=pltpu.CompilerParams(has_side_effects=True),
        )(x1)

    # Non-aliasing variant: materialize a fresh copy with one whole-array
    # HBM->HBM DMA (no VMEM staging, no grid, VMEM-budget independent on
    # every TPU generation).
    return pl.pallas_call(
        _hbm_copy_kernel,
        out_shape=out_shape,
        in_specs=[pl.BlockSpec(memory_space=pl.ANY)],
        out_specs=pl.BlockSpec(memory_space=pl.ANY),
        scratch_shapes=[pltpu.SemaphoreType.DMA(())],
    )(x1)


def init_params(input_size, hidden_size, key):
    """Deterministic init of fc1 params (constructed but unused, for parity)."""
    kw, kb = jax.random.split(key)
    bound = 1.0 / jnp.sqrt(input_size)
    w = jax.random.uniform(kw, (hidden_size, input_size), jnp.float32, -bound, bound)
    b = jax.random.uniform(kb, (hidden_size,), jnp.float32, -bound, bound)
    # TODO(synk): fc1 / ReLU exist in the PyTorch module but are never applied
    # in ID.forward, so these parameters are intentionally unused.
    return {"fc1_w": w, "fc1_b": b}


if __name__ == "__main__":
    key = jax.random.PRNGKey(0)
    k1, k2, k3, k4, kp = jax.random.split(key, 5)

    # Small shapes consistent with the module's Linear(input_size, hidden_size).
    batch, input_size, hidden_size = 8, 32, 32
    x1 = jax.random.normal(k1, (batch, input_size), jnp.float32)
    x2 = jax.random.normal(k2, (batch, input_size), jnp.float32)
    _params = init_params(input_size, hidden_size, kp)  # constructed, unused

    # Default path: zero-copy aliased identity kernel.
    out = id_forward(x1, x2)
    jax.block_until_ready(out)
    assert out.shape == x1.shape and out.dtype == x1.dtype
    assert jnp.array_equal(out, x1)

    # Explicit-copy path: single whole-array HBM->HBM DMA (no VMEM staging).
    out_copy = id_forward(x1, x2, donate=False)
    jax.block_until_ready(out_copy)
    assert jnp.array_equal(out_copy, x1)

    # Odd shape (not a multiple of (8, 128)) — ANY-space refs need no tiling.
    z1 = jax.random.normal(k3, (8, 30), jnp.float32)
    z_out = id_forward(z1, None, donate=False)
    jax.block_until_ready(z_out)
    assert jnp.array_equal(z_out, z1)

    # Narrow dtype — no packed-sublane constraints since nothing is tiled.
    w1 = jax.random.normal(k4, (16, 256), jnp.float32).astype(jnp.bfloat16)
    w_out = id_forward(w1, None)
    jax.block_until_ready(w_out)
    assert jnp.array_equal(w_out, w1)

    print("KERNEL_OK")
</pallas_src>

<mosaic_0001>
module attributes {stable_mosaic.version = 11 : i64} {
  func.func @_alias_identity_kernel(%arg0: memref<8x32xf32, #tpu.memory_space<any>>, %arg1: memref<8x32xf32, #tpu.memory_space<any>>) attributes {dimension_semantics = [], scalar_prefetch = 0 : i64, scratch_operands = 0 : i64, tpu.core_type = #tpu.core_type<tc>} {
    return
  }
}

</mosaic_0001>

<bundles_post_ra>
// kernel: tpu_custom_call.1
= control target key start
LH: loop header
LB: loop body
LE: loop exit
PB: predicated region body
PF: predicated region fallthrough
CT: control target
= control target key end

     0   :  { %s16_s0 = inlined_call_operand.hbm [shape: f32[8,32], index: 0, kind: input, shape index: {}, may-alias: {0,1}]   ;;  %s17_s1 = inlined_call_operand.hbm [shape: f32[8,32], index: 1, kind: output, shape index: {}, may-alias: {0,1}]  }

</bundles_post_ra>
